<compile_context>
chip_gen: v7x
topology: tpu7x:2x2x1
jax: 0.10.0
libtpu: 0.0.40
codegen_flags: <defaults>
</compile_context>

<pallas_src>
import math
import functools

import jax
import jax.numpy as jnp
from jax.experimental import pallas as pl
from jax.experimental.pallas import tpu as pltpu


# ---------------------------------------------------------------------------
# tiling helpers
# ---------------------------------------------------------------------------
def _pick_head_block(num_heads, head_dim):
    """Largest head-block HB dividing num_heads with HB*head_dim <= 512,
    preferring lane-aligned (HB*head_dim % 128 == 0) blocks."""
    divs = [hb for hb in range(1, num_heads + 1)
            if num_heads % hb == 0 and hb * head_dim <= 512]
    if not divs:
        return 1
    aligned = [hb for hb in divs if (hb * head_dim) % 128 == 0]
    return max(aligned) if aligned else max(divs)


def _pick_q_tile(seq_len):
    if seq_len <= 512:
        return seq_len
    for tq in (512, 256, 128):
        if seq_len % tq == 0:
            return tq
    return seq_len  # TODO(synk): pad ragged sequence lengths


def _pick_row_tile(m):
    if m <= 1024:
        return m
    for tm in (1024, 512, 256, 128):
        if m % tm == 0:
            return tm
    return m


# ---------------------------------------------------------------------------
# Kernel 1: fused Q/K/V projection   qkv = x @ [Wq*s | Wk | Wv] + [bq*s|bk|bv]
#   (row-tiled over M, weight stays VMEM-resident, bf16 MXU, f32 accumulate)
# ---------------------------------------------------------------------------
def _qkv_linear_kernel(x_ref, w_ref, b_ref, o_ref):
    acc = jnp.dot(x_ref[...].astype(jnp.bfloat16), w_ref[...],
                  preferred_element_type=jnp.float32)
    o_ref[...] = (acc + b_ref[...]).astype(o_ref.dtype)


def fused_qkv_linear(x, w_bf16, b):
    M, K = x.shape
    N = w_bf16.shape[1]
    TM = _pick_row_tile(M)
    return pl.pallas_call(
        _qkv_linear_kernel,
        out_shape=jax.ShapeDtypeStruct((M, N), jnp.bfloat16),
        grid=(M // TM,),
        in_specs=[
            pl.BlockSpec((TM, K), lambda i: (i, 0)),   # activations, streamed
            pl.BlockSpec((K, N), lambda i: (0, 0)),    # weight, resident
            pl.BlockSpec((1, N), lambda i: (0, 0)),    # bias, resident
        ],
        out_specs=pl.BlockSpec((TM, N), lambda i: (i, 0)),
        compiler_params=pltpu.CompilerParams(dimension_semantics=("parallel",)),
    )(x, w_bf16, b.reshape(1, N))


# ---------------------------------------------------------------------------
# Kernel 2: multi-head attention.  Grid = (batch, head_blocks, q_tiles).
#   q/k/v are read straight from the fused (B, S, 3*H*D) projection output.
#   Context is written lane-dense in (B, S, H*D) layout.
# ---------------------------------------------------------------------------
def _attention_kernel(q_ref, k_ref, v_ref, mask_ref, ctx_ref, *probs_refs,
                      head_dim, heads_per_block, write_probs):
    mask = mask_ref[0, 0]                      # (1, S) additive HF mask
    D = head_dim
    for hh in range(heads_per_block):          # small static unroll
        sl = slice(hh * D, (hh + 1) * D)
        q = q_ref[0, :, sl]                    # (TQ, D) bf16, already 1/sqrt(D)-scaled
        k = k_ref[0, :, sl]                    # (S,  D) bf16
        v = v_ref[0, :, sl]                    # (S,  D) bf16

        # q @ k^T with the transpose absorbed into the contraction (no k.T copy).
        scores = jax.lax.dot_general(
            q, k, dimension_numbers=(((1,), (1,)), ((), ())),
            preferred_element_type=jnp.float32)            # (TQ, S) f32
        scores = scores + mask

        m = jnp.max(scores, axis=-1, keepdims=True)
        e = jnp.exp(scores - m)
        denom = jnp.sum(e, axis=-1, keepdims=True)
        probs = e * pl.reciprocal(denom, approx=True)      # (TQ, S) f32

        ctx = jnp.dot(probs.astype(jnp.bfloat16), v,
                      preferred_element_type=jnp.float32)  # (TQ, D) f32
        ctx_ref[0, :, sl] = ctx.astype(ctx_ref.dtype)

        if write_probs:
            probs_refs[0][0, hh] = probs


def attention(qkv, attn_mask, num_heads, head_dim, *, output_attentions=False):
    B, S, _ = qkv.shape
    H, D = num_heads, head_dim
    HB = _pick_head_block(H, D)
    TQ = _pick_q_tile(S)
    n_hblocks = H // HB
    grid = (B, n_hblocks, S // TQ)

    in_specs = [
        # Q tile for this (batch, head-block, query-tile)
        pl.BlockSpec((1, TQ, HB * D), lambda b, h, qi: (b, qi, h)),
        # K / V: full sequence for this head-block (offset into the fused qkv)
        pl.BlockSpec((1, S, HB * D), lambda b, h, qi: (b, 0, n_hblocks + h)),
        pl.BlockSpec((1, S, HB * D), lambda b, h, qi: (b, 0, 2 * n_hblocks + h)),
        # additive attention mask (B, 1, 1, S)
        pl.BlockSpec((1, 1, 1, S), lambda b, h, qi: (b, 0, 0, 0)),
    ]
    out_shape = [jax.ShapeDtypeStruct((B, S, H * D), jnp.bfloat16)]
    out_specs = [pl.BlockSpec((1, TQ, HB * D), lambda b, h, qi: (b, qi, h))]
    if output_attentions:
        out_shape.append(jax.ShapeDtypeStruct((B, H, S, S), jnp.float32))
        out_specs.append(
            pl.BlockSpec((1, HB, TQ, S), lambda b, h, qi: (b, h, qi, 0)))

    kernel = functools.partial(_attention_kernel, head_dim=D,
                               heads_per_block=HB,
                               write_probs=output_attentions)
    outs = pl.pallas_call(
        kernel,
        out_shape=tuple(out_shape),
        grid=grid,
        in_specs=in_specs,
        out_specs=tuple(out_specs),
        compiler_params=pltpu.CompilerParams(
            dimension_semantics=("parallel", "parallel", "arbitrary")),
    )(qkv, qkv, qkv, attn_mask)

    ctx = outs[0]
    probs = outs[1] if output_attentions else None
    return ctx, probs


# ---------------------------------------------------------------------------
# Kernel 3: ElectraSelfOutput — dense + bias + residual + LayerNorm, fused.
# ---------------------------------------------------------------------------
def _out_dense_layernorm_kernel(x_ref, res_ref, w_ref, b_ref, g_ref, beta_ref,
                                o_ref, *, eps):
    y = jnp.dot(x_ref[...], w_ref[...], preferred_element_type=jnp.float32)
    y = y + b_ref[...] + res_ref[...]
    mean = jnp.mean(y, axis=-1, keepdims=True)
    var = jnp.mean(jnp.square(y - mean), axis=-1, keepdims=True)
    y = (y - mean) * jax.lax.rsqrt(var + eps)
    o_ref[...] = y * g_ref[...] + beta_ref[...]


def out_dense_layernorm(x, residual, w_bf16, b, gamma, beta, *, eps):
    M, K = x.shape
    N = w_bf16.shape[1]
    TM = _pick_row_tile(M)
    kernel = functools.partial(_out_dense_layernorm_kernel, eps=eps)
    return pl.pallas_call(
        kernel,
        out_shape=jax.ShapeDtypeStruct((M, N), jnp.float32),
        grid=(M // TM,),
        in_specs=[
            pl.BlockSpec((TM, K), lambda i: (i, 0)),   # attention context (bf16)
            pl.BlockSpec((TM, N), lambda i: (i, 0)),   # residual (f32)
            pl.BlockSpec((K, N), lambda i: (0, 0)),    # weight, resident
            pl.BlockSpec((1, N), lambda i: (0, 0)),    # bias
            pl.BlockSpec((1, N), lambda i: (0, 0)),    # LN gamma
            pl.BlockSpec((1, N), lambda i: (0, 0)),    # LN beta
        ],
        out_specs=pl.BlockSpec((TM, N), lambda i: (i, 0)),
        compiler_params=pltpu.CompilerParams(dimension_semantics=("parallel",)),
    )(x, residual, w_bf16, b.reshape(1, N), gamma.reshape(1, N),
      beta.reshape(1, N))


# ---------------------------------------------------------------------------
# Wrapper reproducing ElectraAttention.forward (absolute pos-emb, no cache,
# no head_mask, eval-mode dropout).
# ---------------------------------------------------------------------------
def electra_attention(hidden_states, params, attention_mask=None, *,
                      num_heads, head_dim, layer_norm_eps=1e-12,
                      output_attentions=False):
    B, S, Hd = hidden_states.shape
    assert Hd == num_heads * head_dim
    x2d = hidden_states.reshape(B * S, Hd)
    if attention_mask is None:
        attention_mask = jnp.zeros((B, 1, 1, S), jnp.float32)

    scale = 1.0 / math.sqrt(head_dim)
    # Fold the softmax scale into the Q projection and fuse Q/K/V into one
    # (Hd, 3*Hd) matmul; weights pre-cast to bf16 once (reused by every tile).
    w_qkv = jnp.concatenate(
        [params["wq"] * scale, params["wk"], params["wv"]], axis=1
    ).astype(jnp.bfloat16)
    b_qkv = jnp.concatenate(
        [params["bq"] * scale, params["bk"], params["bv"]], axis=0
    ).astype(jnp.float32)

    qkv = fused_qkv_linear(x2d, w_qkv, b_qkv)        # (B*S, 3*Hd) bf16
    qkv = qkv.reshape(B, S, 3 * Hd)                  # free reshape

    ctx, probs = attention(qkv, attention_mask, num_heads, head_dim,
                           output_attentions=output_attentions)

    attn_out = out_dense_layernorm(
        ctx.reshape(B * S, Hd), x2d,
        params["wo"].astype(jnp.bfloat16), params["bo"],
        params["ln_gamma"], params["ln_beta"], eps=layer_norm_eps)
    attn_out = attn_out.reshape(B, S, Hd)

    if output_attentions:
        return attn_out, probs
    return (attn_out,)


# ---------------------------------------------------------------------------
# Pure-JAX f32 reference (mirrors the PyTorch module)
# ---------------------------------------------------------------------------
def reference(hidden_states, params, attention_mask, num_heads, head_dim,
              eps=1e-12):
    B, S, Hd = hidden_states.shape

    def lin(x, w, b):
        return x @ w + b

    def split(t):
        return t.reshape(B, S, num_heads, head_dim).transpose(0, 2, 1, 3)

    q = split(lin(hidden_states, params["wq"], params["bq"]))
    k = split(lin(hidden_states, params["wk"], params["bk"]))
    v = split(lin(hidden_states, params["wv"], params["bv"]))

    scores = jnp.einsum("bhqd,bhkd->bhqk", q, k) / math.sqrt(head_dim)
    scores = scores + attention_mask
    probs = jax.nn.softmax(scores, axis=-1)
    ctx = jnp.einsum("bhqk,bhkd->bhqd", probs, v)
    ctx = ctx.transpose(0, 2, 1, 3).reshape(B, S, Hd)

    y = ctx @ params["wo"] + params["bo"] + hidden_states
    mean = y.mean(-1, keepdims=True)
    var = ((y - mean) ** 2).mean(-1, keepdims=True)
    y = (y - mean) / jnp.sqrt(var + eps) * params["ln_gamma"] + params["ln_beta"]
    return y, probs


if __name__ == "__main__":
    # Small Electra-like config (hidden chosen so head blocks are lane-aligned).
    batch, seq, hidden, num_heads = 2, 8, 128, 4
    head_dim = hidden // num_heads

    key = jax.random.PRNGKey(0)
    ks = jax.random.split(key, 12)

    def w(k, shape, s=0.02):
        return jax.random.normal(k, shape, dtype=jnp.float32) * s

    hidden_states = jax.random.normal(ks[0], (batch, seq, hidden), jnp.float32)

    # nn.Linear weights stored pre-transposed to (in, out).
    params = {
        "wq": w(ks[1], (hidden, hidden)), "bq": w(ks[2], (hidden,)),
        "wk": w(ks[3], (hidden, hidden)), "bk": w(ks[4], (hidden,)),
        "wv": w(ks[5], (hidden, hidden)), "bv": w(ks[6], (hidden,)),
        "wo": w(ks[7], (hidden, hidden)), "bo": w(ks[8], (hidden,)),
        "ln_gamma": 1.0 + w(ks[9], (hidden,), 0.1),
        "ln_beta": w(ks[10], (hidden,), 0.1),
    }

    # HF-style additive attention mask (B, 1, 1, S): 0 keep, -1e9 masked.
    keep = (jax.random.uniform(ks[11], (batch, 1, 1, seq)) > 0.2).astype(jnp.float32)
    attention_mask = (1.0 - keep) * -1e9

    attn_out, probs = electra_attention(
        hidden_states, params, attention_mask,
        num_heads=num_heads, head_dim=head_dim, output_attentions=True)
    jax.block_until_ready((attn_out, probs))

    ref_out, ref_probs = reference(hidden_states, params, attention_mask,
                                   num_heads, head_dim)

    assert attn_out.shape == (batch, seq, hidden)
    assert probs.shape == (batch, num_heads, seq, seq)
    # bf16 MXU inputs + approx reciprocal -> loosened tolerance vs f32 reference.
    assert jnp.allclose(attn_out, ref_out, atol=2e-2, rtol=2e-2), \
        float(jnp.max(jnp.abs(attn_out - ref_out)))
    assert jnp.allclose(probs, ref_probs, atol=2e-2, rtol=2e-2), \
        float(jnp.max(jnp.abs(probs - ref_probs)))

    # Fast path: skip the (B, H, S, S) attention-probs HBM writeback entirely.
    (attn_out_fast,) = electra_attention(
        hidden_states, params, attention_mask,
        num_heads=num_heads, head_dim=head_dim, output_attentions=False)
    jax.block_until_ready(attn_out_fast)
    assert jnp.allclose(attn_out_fast, ref_out, atol=2e-2, rtol=2e-2)

    print("KERNEL_OK")
</pallas_src>

<mosaic_0001>
module attributes {stable_mosaic.version = 11 : i64} {
  func.func @_qkv_linear_kernel(%arg0: i32, %arg1: memref<16x128xf32, #tpu.memory_space<vmem>>, %arg2: memref<128x384xbf16, #tpu.memory_space<vmem>>, %arg3: memref<1x384xf32, #tpu.memory_space<vmem>>, %arg4: memref<16x384xbf16, #tpu.memory_space<vmem>>) attributes {dimension_semantics = [#tpu.dimension_semantics<parallel>], iteration_bounds = array<i64: 1>, scalar_prefetch = 0 : i64, scratch_operands = 0 : i64, tpu.core_type = #tpu.core_type<tc>, window_params = [{transform_indices = @transform_0, window_bounds = array<i64: 16, 128>}, {pipeline_mode = #tpu.pipeline_mode<synchronous>, transform_indices = @transform_1, window_bounds = array<i64: 128, 384>}, {pipeline_mode = #tpu.pipeline_mode<synchronous>, transform_indices = @transform_2, window_bounds = array<i64: 1, 384>}, {transform_indices = @transform_3, window_bounds = array<i64: 16, 384>}]} {
    %c0 = arith.constant 0 : index
    %c0_0 = arith.constant 0 : index
    %0 = vector.load %arg1[%c0, %c0_0] : memref<16x128xf32, #tpu.memory_space<vmem>>, vector<16x128xf32>
    %1 = arith.truncf %0 : vector<16x128xf32> to vector<16x128xbf16>
    %c0_1 = arith.constant 0 : index
    %c0_2 = arith.constant 0 : index
    %2 = vector.load %arg2[%c0_1, %c0_2] : memref<128x384xbf16, #tpu.memory_space<vmem>>, vector<128x384xbf16>
    %cst = arith.constant dense<0.000000e+00> : vector<16x384xf32>
    %3 = tpu.matmul %1, %2, %cst {dimension_numbers = #tpu.dot_dimension_numbers<[1], [0], [0], [1], [0, 0, 1, 1], [], []>} : vector<16x128xbf16>, vector<128x384xbf16>, vector<16x384xf32> -> vector<16x384xf32>
    %c0_3 = arith.constant 0 : index
    %c0_4 = arith.constant 0 : index
    %4 = vector.load %arg3[%c0_3, %c0_4] : memref<1x384xf32, #tpu.memory_space<vmem>>, vector<1x384xf32>
    %5 = vector.broadcast %4 : vector<1x384xf32> to vector<16x384xf32>
    %6 = arith.addf %3, %5 : vector<16x384xf32>
    %7 = arith.truncf %6 : vector<16x384xf32> to vector<16x384xbf16>
    %c0_5 = arith.constant 0 : index
    %c0_6 = arith.constant 0 : index
    %8 = vector.load %arg4[%c0_5, %c0_6] : memref<16x384xbf16, #tpu.memory_space<vmem>>, vector<16x384xbf16>
    tpu.vector_store %arg4[%c0_5, %c0_6], %7 {strides = array<i32>} : memref<16x384xbf16, #tpu.memory_space<vmem>>, vector<16x384xbf16>,
    return
  }
  func.func @transform_0(%arg0: i32) -> (i32, i32) {
    %c0_i32 = arith.constant 0 : i32
    %c0_i32_0 = arith.constant 0 : i32
    return %arg0, %c0_i32 : i32, i32
  }
  func.func @transform_1(%arg0: i32) -> (i32, i32) {
    %c0_i32 = arith.constant 0 : i32
    %c0_i32_0 = arith.constant 0 : i32
    %c0_i32_1 = arith.constant 0 : i32
    return %c0_i32, %c0_i32_0 : i32, i32
  }
  func.func @transform_2(%arg0: i32) -> (i32, i32) {
    %c0_i32 = arith.constant 0 : i32
    %c0_i32_0 = arith.constant 0 : i32
    %c0_i32_1 = arith.constant 0 : i32
    return %c0_i32, %c0_i32_0 : i32, i32
  }
  func.func @transform_3(%arg0: i32) -> (i32, i32) {
    %c0_i32 = arith.constant 0 : i32
    %c0_i32_0 = arith.constant 0 : i32
    return %arg0, %c0_i32 : i32, i32
  }
}

</mosaic_0001>

<bundles_post_ra>
// kernel: tpu_custom_call.1
= control target key start
LH: loop header
LB: loop body
LE: loop exit
PB: predicated region body
PF: predicated region fallthrough
CT: control target
= control target key end

     0   :  { %8 = vsyncpa [#allocation3], 0  ;;  %s600_s0 = inlined_call_operand.hbm [shape: f32[16,128], index: 0, kind: input, shape index: {}]   ;;  %s601_s1 = inlined_call_operand.hbm [shape: bf16[128,384], index: 1, kind: input, shape index: {}]   ;;  %s602_s2 = inlined_call_operand.vmem [shape: f32[1,384], index: 2, kind: input, shape index: {}]   ;;  %s603_s3 = inlined_call_operand.hbm [shape: bf16[16,384], index: 3, kind: output, shape index: {}]  }
   0x1   :  { %9 = vsyncpa [#allocation6], 0 }
   0x2   :  { %10 = vsyncpa [#allocation4], 0  ;;  %s525_s12 = smov [#allocation2]   ;;  %s453_s16 = scalar_lea.hbm %s600_s0, 256 }
   0x3   :  { %s16_s13 = sshll.u32 %s525_s12, 4  ;;  %p454_p0 = scmp.ne.s32.totalorder %s600_s0, %s453_s16  ;;  %s17_s13 = int_to_ptr.vmem [resolvable:$true] %s16_s13 }
   0x4   :  { %p457_p1 = scmp.lt.u32.totalorder %s453_s16, %s600_s0 }
   0x6   :  { %p459_p2 = pnand %p457_p1, %p454_p0 }
   0x8   :  { %462 = shalt.err (!%p459_p2)
}
   0x9   :  { %s463_s21 = scalar_lea.vmem %s17_s13, 256  ;;  %p468_p4 = scmp.lt.s32.totalorder %s17_s13, %s17_s13 }
   0xa   :  { %p464_p3 = scmp.ne.s32.totalorder %s17_s13, %s463_s21  ;;  %p469_p5 = scmp.lt.s32.totalorder %s463_s21, %s463_s21 }
   0xc   :  { %p470_p6 = por %p469_p5, %p468_p4 }
   0xe   :  { %p471_p7 = pnand %p470_p6, %p464_p3 }
  0x10   :  { %474 = shalt.err (!%p471_p7)
}
  0x11   :  { %s526_s22 = smov 128   ;;  %s527_s23 = smov 8  }
  0x12   :  { %22 = dma.hbm_to_vmem [thread:$0]  %s600_s0, 256, %s17_s13, [#allocation3], %s526_s22, %s526_s22, %s527_s23  }
  0x13   :  { %s528_s26 = smov [#allocation5]   ;;  %s475_s30 = scalar_lea.hbm %s601_s1, 3072 }
  0x14   :  { %s28_s27 = sshll.u32 %s528_s26, 4  ;;  %p476_p8 = scmp.ne.s32.totalorder %s601_s1, %s475_s30  ;;  %s29_s27 = int_to_ptr.vmem [resolvable:$true] %s28_s27 }
  0x15   :  { %p479_p9 = scmp.lt.u32.totalorder %s475_s30, %s601_s1 }
  0x17   :  { %p481_p10 = pnand %p479_p9, %p476_p8 }
  0x19   :  { %484 = shalt.err (!%p481_p10)
}
  0x1a   :  { %s485_s8 = scalar_lea.vmem %s29_s27, 3072  ;;  %p490_p12 = scmp.lt.s32.totalorder %s29_s27, %s29_s27 }
  0x1b   :  { %p486_p11 = scmp.ne.s32.totalorder %s29_s27, %s485_s8  ;;  %p491_p13 = scmp.lt.s32.totalorder %s485_s8, %s485_s8 }
  0x1d   :  { %p492_p0 = por %p491_p13, %p490_p12 }
  0x1f   :  { %p493_p1 = pnand %p492_p0, %p486_p11 }
  0x21   :  { %496 = shalt.err (!%p493_p1)
}
  0x22   :  { %s529_s0 = smov 192   ;;  %s530_s9 = smov 12  }
  0x23   :  { %34 = dma.hbm_to_vmem [thread:$0]  %s601_s1, 3072, %s29_s27, [#allocation6], %s529_s0, %s529_s0, %s530_s9  }
  0x24   :  { %519 = dma.done.wait [#allocation3], 256  }
  0x25   :  { %520 = vsyncadd [#allocation3], 4294967040 }
  0x26   :  { %521 = dma.done.wait [#allocation6], 3072  }
  0x27   :  { %522 = vsyncadd [#allocation6], 4294964224  ;;  %v531_v0 = vmov 0.0   ;;  %vm532_vm0 = vmmov 0   ;;  %v533_v1 = vmov 0   ;;  %v44_v25 = vld [vmem:[#allocation2] sm:$0xff]  ;;  %v81_v29 = vlaneseq }
  0x28   :  { %391 = vmatprep.subr.bf16.mxu1 %v531_v0  ;;  %407 = vmatprep.mubr.msk.bf16.mxu1 %vm532_vm0, %v531_v0  ;;  %v421_v2 = vld [vmem:[#allocation5 + $0x4] ss:$12 sps:$4 sm:$0xff]   ;;  %v423_v3 = vld [vmem:[#allocation5 + $0x8] ss:$12 sps:$4 sm:$0xff]   ;;  %v424_v4 = vld [vmem:[#allocation5] ss:$12 sps:$4 sm:$0xff]  }
  0x29   :  { %256 = vmatprep.mubr.bf16.mxu0 %v533_v1  ;;  %224 = vmatprep.subr.bf16.mxu0 %v421_v2  ;;  %v425_v5 = vld [vmem:[#allocation5 + $0x1c] ss:$12 sps:$4 sm:$0xff]   ;;  %v427_v6 = vld [vmem:[#allocation5 + $0x20] ss:$12 sps:$4 sm:$0xff]   ;;  %v428_v7 = vld [vmem:[#allocation5 + $0x18] ss:$12 sps:$4 sm:$0xff]  }
  0x2a   :  { %392 = vmatpush3.bf16.msra.mxu1 %v423_v3  ;;  %225 = vmatpush1.bf16.msra.mxu0 %v424_v4  ;;  %v429_v8 = vld [vmem:[#allocation5 + $0x34] ss:$12 sps:$4 sm:$0xff]   ;;  %v431_v9 = vld [vmem:[#allocation5 + $0x38] ss:$12 sps:$4 sm:$0xff]   ;;  %v432_v10 = vld [vmem:[#allocation5 + $0x30] ss:$12 sps:$4 sm:$0xff]  }
  0x2b   :  { %393 = vmatprep.subr.bf16.mxu1 %v531_v0  ;;  %226 = vmatprep.subr.bf16.mxu0 %v425_v5  ;;  %v433_v11 = vld [vmem:[#allocation5 + $0x4c] ss:$12 sps:$4 sm:$0xff]   ;;  %v435_v12 = vld [vmem:[#allocation5 + $0x50] ss:$12 sps:$4 sm:$0xff]   ;;  %v436_v13 = vld [vmem:[#allocation5 + $0x48] ss:$12 sps:$4 sm:$0xff]  }
  0x2c   :  { %v437_v14 = vld [vmem:[#allocation5 + $0x64] ss:$12 sps:$4 sm:$0xff]   ;;  %v439_v15 = vld [vmem:[#allocation5 + $0x68] ss:$12 sps:$4 sm:$0xff]   ;;  %v440_v16 = vld [vmem:[#allocation5 + $0x60] ss:$12 sps:$4 sm:$0xff]  }
  0x2d   :  { %v441_v17 = vld [vmem:[#allocation5 + $0x7c] ss:$12 sps:$4 sm:$0xff]   ;;  %v443_v18 = vld [vmem:[#allocation5 + $0x80] ss:$12 sps:$4 sm:$0xff]   ;;  %v444_v19 = vld [vmem:[#allocation5 + $0x78] ss:$12 sps:$4 sm:$0xff]  }
  0x2e   :  { %394 = vmatpush3.bf16.msra.mxu1 %v427_v6  ;;  %227 = vmatpush1.bf16.msra.mxu0 %v428_v7  ;;  %v445_v20 = vld [vmem:[#allocation5 + $0x94] ss:$12 sps:$4 sm:$0xff]   ;;  %v447_v21 = vld [vmem:[#allocation5 + $0x98] ss:$12 sps:$4 sm:$0xff]   ;;  %v448_v22 = vld [vmem:[#allocation5 + $0x90] ss:$12 sps:$4 sm:$0xff]  }
  0x2f   :  { %395 = vmatprep.subr.bf16.mxu1 %v531_v0  ;;  %228 = vmatprep.subr.bf16.mxu0 %v429_v8  ;;  %v449_v23 = vld [vmem:[#allocation5 + $0xac] ss:$12 sps:$4 sm:$0xff]   ;;  %v451_v24 = vld [vmem:[#allocation5 + $0xb0] ss:$12 sps:$4 sm:$0xff]   ;;  %v452_v27 = vld [vmem:[#allocation5 + $0xa8] ss:$12 sps:$4 sm:$0xff]  }
  0x30   :  { %v45_v26 = vld [vmem:[#allocation2 + $0x8] sm:$0xff]  ;;  %v82_v30 = vshrl.u32 %v81_v29, 7  ;;  %v79_v32 = vld [vmem:[%s602_s2] sm:$0x7]  ;;  %s534_s2 = smov [#allocation7]  }
  0x31   :  { %v46_v28 = vpack.c.bf16 %v45_v26, %v44_v25  ;;  %s337_s13 = sshll.u32 %s534_s2, 4  ;;  %s338_s13 = int_to_ptr.vmem [resolvable:$true] %s337_s13 }
  0x32   :  { %396 = vmatpush3.bf16.msra.mxu1 %v431_v9  ;;  %229 = vmatpush1.bf16.msra.mxu0 %v432_v10  ;;  %v91_v31 = vsub.s32 2, %v82_v30  ;;  %v83_v33 = vsub.s32 0, %v82_v30  ;;  %v87_v34 = vsub.s32 1, %v82_v30  ;;  %s497_s14 = scalar_lea.vmem %s338_s13, 384  ;;  %p502_p3 = scmp.lt.s32.totalorder %s338_s13, %s338_s13 }
  0x33   :  { %397 = vmatprep.subr.bf16.mxu1 %v531_v0  ;;  %230 = vmatprep.subr.bf16.mxu0 %v433_v11  ;;  %p498_p2 = scmp.ne.s32.totalorder %s338_s13, %s497_s14  ;;  %p503_p4 = scmp.lt.s32.totalorder %s497_s14, %s497_s14 }
  0x34   :  { %v92_v35 = vrot.slane %v79_v32, %v91_v31  ;;  %v84_v36 = vrot.slane %v79_v32, %v83_v33  ;;  %v88_v37 = vrot.slane %v79_v32, %v87_v34 }
  0x35   :  { %p504_p5 = por %p503_p4, %p502_p3 }
  0x36   :  { %398 = vmatpush3.bf16.msra.mxu1 %v435_v12  ;;  %231 = vmatpush1.bf16.msra.mxu0 %v436_v13 }
  0x37   :  { %399 = vmatprep.subr.bf16.mxu1 %v531_v0  ;;  %232 = vmatprep.subr.bf16.mxu0 %v437_v14  ;;  %p505_p6 = pnand %p504_p5, %p498_p2 }
  0x3a   :  { %400 = vmatpush3.bf16.msra.mxu1 %v439_v15  ;;  %233 = vmatpush1.bf16.msra.mxu0 %v440_v16 }
  0x3b   :  { %401 = vmatprep.subr.bf16.mxu1 %v531_v0  ;;  %234 = vmatprep.subr.bf16.mxu0 %v441_v17 }
  0x3e   :  { %402 = vmatpush3.bf16.msra.mxu1 %v443_v18  ;;  %235 = vmatpush1.bf16.msra.mxu0 %v444_v19 }
  0x3f   :  { %403 = vmatprep.subr.bf16.mxu1 %v531_v0  ;;  %236 = vmatprep.subr.bf16.mxu0 %v445_v20 }
  0x42   :  { %404 = vmatpush3.bf16.msra.mxu1 %v447_v21  ;;  %237 = vmatpush1.bf16.msra.mxu0 %v448_v22 }
  0x43   :  { %405 = vmatprep.subr.bf16.mxu1 %v531_v0  ;;  %238 = vmatprep.subr.bf16.mxu0 %v449_v23 }
  0x46   :  { %406 = vmatpush3.bf16.msra.mxu1 %v451_v24  ;;  %239 = vmatpush1.bf16.msra.mxu0 %v452_v27 }
  0x49   :  { %408 = vmatmul.mubr.bf16.vlgmr.msra.gmra.mrb[0].mxu1 %v46_v28  ;;  %257 = vmatmul.mubr.bf16.vlgmr.msra.gmra.mrb[0].mxu0 %v46_v28 }
 0x11c   :  { %v301_v38 = vpop.f32.mrb[0].mxu1  ;;  %v258_v40 = vpop.f32.mrb[0].mxu0 }
 0x11d   :  { %v302_v39 = vadd.f32 %v301_v38, %v92_v35  ;;  %v409_v41 = vpop.f32.mrb[1].mxu1  ;;  %v259_v42 = vadd.f32 %v258_v40, %v84_v36  ;;  %v260_v43 = vpop.f32.mrb[1].mxu0 }
 0x11e   :  { %v304_v44 = vpop.f32.mrb[2].mxu1  ;;  %v261_v46 = vadd.f32 %v260_v43, %v88_v37  ;;  %v262_v48 = vpop.f32.mrb[2].mxu0 }
 0x11f   :  { %v379_v45 = vpack.c.bf16 %v302_v39, %v302_v39  ;;  %v305_v47 = vadd.f32 %v304_v44, %v92_v35  ;;  %v410_v49 = vpop.f32.mrb[3].mxu1  ;;  %v263_v50 = vadd.f32 %v262_v48, %v84_v36  ;;  %v264_v51 = vpop.f32.mrb[3].mxu0 }
 0x120   :  { %v378_v52 = vpack.c.bf16 %v261_v46, %v259_v42  ;;  %v265_v54 = vadd.f32 %v264_v51, %v88_v37 }
 0x121   :  { %329 = vst [vmem:[#allocation7 + $0x8] sm:$0xf] %v379_v45  ;;  %v381_v53 = vpack.c.bf16 %v305_v47, %v305_v47 }
 0x122   :  { %328 = vst [vmem:[#allocation7] sm:$0xff] %v378_v52  ;;  %v380_v55 = vpack.c.bf16 %v265_v54, %v263_v50 }
 0x123   :  { %331 = vst [vmem:[#allocation7 + $0x14] sm:$0xf] %v381_v53 }
 0x124   :  { %330 = vst [vmem:[#allocation7 + $0xc] sm:$0xff] %v380_v55 }
 0x125   :  { %508 = shalt.err (!%p505_p6)
}
 0x126   :  { %s509_s17 = scalar_lea.hbm %s603_s3, 384 }
 0x127   :  { %p510_p7 = scmp.ne.s32.totalorder %s603_s3, %s509_s17  ;;  %p513_p8 = scmp.lt.u32.totalorder %s509_s17, %s603_s3 }
 0x129   :  { %p515_p9 = pnand %p513_p8, %p510_p7 }
 0x12b   :  { %518 = shalt.err (!%p515_p9)
}
 0x12c   :  { %343 = dma.vmem_to_hbm [thread:$0]  %s338_s13, 384, %s603_s3, [#allocation4], %s529_s0, %s529_s0, %s530_s9  }
 0x12d   :  { %523 = dma.done.wait [#allocation4], 384  }
 0x12e   :  { %524 = vsyncadd [#allocation4], 4294966912 }
 0x12f   :  { %347 = vsyncpa [#allocation3], 1 }
 0x130   :  { %348 = vsyncpa [#allocation6], 1 }
 0x131   :  { %349 = vsyncpa [#allocation4], 1 }

</bundles_post_ra>
